<compile_context>
chip_gen: v7x
topology: tpu7x:2x2x1
jax: 0.10.0
libtpu: 0.0.40
codegen_flags: <defaults>
</compile_context>

<pallas_src>
import jax
import jax.numpy as jnp
from jax import lax
from jax.experimental import pallas as pl
from jax.experimental.pallas import tpu as pltpu


def _max_pool_kernel(x_ref, val_ref, idx_ref):
    x = x_ref[...]                                        # (row_tile, G, T)
    t = x.shape[-1]
    mk = jnp.max(x, axis=-1, keepdims=True)               # (row_tile, G, 1)
    # First index attaining the max; also accept NaN positions so a NaN segment max
    # still yields an in-range index (torch.max returns the NaN's index).
    hit = (x == mk) | jnp.isnan(x)
    ids = lax.broadcasted_iota(jnp.int32, x.shape, x.ndim - 1)
    idx = jnp.min(jnp.where(hit, ids, jnp.int32(t)), axis=-1)   # (row_tile, G)
    val_ref[...] = jnp.max(x, axis=-1).astype(val_ref.dtype)
    idx_ref[...] = idx


def _mean_pool_kernel(x_ref, out_ref):
    x = x_ref[...].astype(jnp.float32)                    # (row_tile, G, T)
    inv_t = jnp.float32(1.0 / x.shape[-1])                # sum * (1/T) instead of mean
    out_ref[...] = (jnp.sum(x, axis=-1) * inv_t).astype(out_ref.dtype)


_TINY_FALLBACK_ELEMS = 1 << 16          # below this, plain XLA reductions win
_BLOCK_VMEM_BUDGET = 3 * 1024 * 1024    # lane-padded bytes per pipeline input buffer


def _choose_group(rows, k):
    """Pick G for the [rows//G, G, T] view: sublane axis of the input block and lane
    axis of the (row_tile, G) output blocks.  Prefer G = K."""
    if 8 <= k <= 512 and rows % k == 0:
        return k
    cands = [g for g in range(8, min(rows, 512) + 1) if rows % g == 0]
    if cands:
        return min(cands, key=lambda g: abs(g - 64))
    return rows if rows <= 512 else 1


def particle_net_pooling(x, conv_pooling, *, force_pallas=False, row_tile=None):
    """x: [B, F, K, T].  'max' -> (values, indices); 'mean' -> values."""
    if conv_pooling not in ("max", "mean"):
        raise NotImplementedError(f"Have not implemented {conv_pooling} pooling")

    B, F, K, T = x.shape
    rows = B * F * K

    # Tiny inputs: pallas_call launch / pipeline setup dominates; let XLA fuse it.
    if not force_pallas and x.size < _TINY_FALLBACK_ELEMS:
        if conv_pooling == "max":
            return jnp.max(x, axis=-1), jnp.argmax(x, axis=-1).astype(jnp.int32)
        return jnp.mean(x, axis=-1)

    itemsize = jnp.dtype(x.dtype).itemsize
    min_sub = max(8, 32 // max(1, itemsize))      # sublane tile: 8 (4B) / 16 (2B) / 32 (1B)

    G = _choose_group(rows, K)
    R = rows // G
    x3 = x.reshape(R, G, T)                       # metadata-only reshape in XLA

    # --- row_tile: as many leading rows as fit the padded-VMEM budget. ---
    lane_pad = -(-T // 128) * 128                 # lanes pad to 128 in VMEM
    sub_pad = -(-G // min_sub) * min_sub
    padded_row_bytes = sub_pad * lane_pad * itemsize
    if row_tile is None:
        rt = max(1, _BLOCK_VMEM_BUDGET // padded_row_bytes)
    else:
        rt = max(1, min(int(row_tile), R))
    rt = max(min_sub, (rt // min_sub) * min_sub)  # keep the 2-D output blocks aligned
    if rt >= R:
        rt = R                                    # full extent (always legal)
    elif row_tile is None:
        # Prefer an exactly dividing tile near the target (avoids a masked tail block
        # and never degrades to tiny tiles like the old halving fallback).
        for d in range(rt, max(min_sub, rt // 2) - 1, -min_sub):
            if R % d == 0:
                rt = d
                break
    grid = (pl.cdiv(R, rt),)                      # non-dividing tiles -> masked tail

    in_specs = [pl.BlockSpec((rt, G, T), lambda i: (i, 0, 0))]
    out_spec = pl.BlockSpec((rt, G), lambda i: (i, 0))
    cparams = pltpu.CompilerParams(
        dimension_semantics=("parallel",),        # rows independent; megacore-shardable
        vmem_limit_bytes=32 * 1024 * 1024,
    )

    if conv_pooling == "max":
        vals, idxs = pl.pallas_call(
            _max_pool_kernel,
            out_shape=(
                jax.ShapeDtypeStruct((R, G), x.dtype),
                jax.ShapeDtypeStruct((R, G), jnp.int32),
            ),
            grid=grid,
            in_specs=in_specs,
            out_specs=(out_spec, out_spec),
            compiler_params=cparams,
        )(x3)
        # TODO(synk): torch returns int64 indices; the TPU kernel emits int32.
        return vals.reshape(B, F, K), idxs.reshape(B, F, K)

    vals = pl.pallas_call(
        _mean_pool_kernel,
        out_shape=jax.ShapeDtypeStruct((R, G), x.dtype),
        grid=grid,
        in_specs=in_specs,
        out_specs=out_spec,
        compiler_params=cparams,
    )(x3)
    return vals.reshape(B, F, K)


if __name__ == "__main__":
    key = jax.random.PRNGKey(0)
    k1, k2 = jax.random.split(key)

    # Case 1: [n_minibatches, n_features, K, n_tracks] = [2, 4, 16, 16]  (grid = 1)
    B, F, K, T = 2, 4, 16, 16
    x1 = jax.random.normal(k1, (B, F, K, T), dtype=jnp.float32)

    max_vals, max_idx = particle_net_pooling(x1, "max", force_pallas=True)
    mean_vals = particle_net_pooling(x1, "mean", force_pallas=True)
    jax.block_until_ready((max_vals, max_idx, mean_vals))

    assert max_vals.shape == (B, F, K) and max_idx.shape == (B, F, K)
    assert mean_vals.shape == (B, F, K)
    assert jnp.array_equal(max_vals, jnp.max(x1, axis=-1))
    assert jnp.array_equal(max_idx, jnp.argmax(x1, axis=-1).astype(jnp.int32))
    assert jnp.allclose(mean_vals, jnp.mean(x1, axis=-1), atol=1e-5, rtol=1e-5)

    # Case 2: exercise the multi-step pipeline (grid > 1) via an explicit row_tile.
    B2, F2, K2, T2 = 2, 8, 16, 16
    x2 = jax.random.normal(k2, (B2, F2, K2, T2), dtype=jnp.float32)
    mv2, mi2 = particle_net_pooling(x2, "max", force_pallas=True, row_tile=8)
    me2 = particle_net_pooling(x2, "mean", force_pallas=True, row_tile=8)
    jax.block_until_ready((mv2, mi2, me2))
    assert jnp.array_equal(mv2, jnp.max(x2, axis=-1))
    assert jnp.array_equal(mi2, jnp.argmax(x2, axis=-1).astype(jnp.int32))
    assert jnp.allclose(me2, jnp.mean(x2, axis=-1), atol=1e-5, rtol=1e-5)

    print("KERNEL_OK")
</pallas_src>

<mosaic_0001>
module attributes {stable_mosaic.version = 11 : i64} {
  func.func @_max_pool_kernel(%arg0: i32, %arg1: memref<8x16x16xf32, #tpu.memory_space<vmem>>, %arg2: memref<8x16xf32, #tpu.memory_space<vmem>>, %arg3: memref<8x16xi32, #tpu.memory_space<vmem>>) attributes {dimension_semantics = [#tpu.dimension_semantics<parallel>], iteration_bounds = array<i64: 1>, scalar_prefetch = 0 : i64, scratch_operands = 0 : i64, tpu.core_type = #tpu.core_type<tc>, window_params = [{transform_indices = @transform_0, window_bounds = array<i64: 8, 16, 16>}, {transform_indices = @transform_1, window_bounds = array<i64: 8, 16>}, {transform_indices = @transform_2, window_bounds = array<i64: 8, 16>}]} {
    %c0 = arith.constant 0 : index
    %c0_0 = arith.constant 0 : index
    %c0_1 = arith.constant 0 : index
    %0 = vector.load %arg1[%c0, %c0_0, %c0_1] : memref<8x16x16xf32, #tpu.memory_space<vmem>>, vector<8x16x16xf32>
    %cst = arith.constant dense<0xFF800000> : vector<8x16xf32>
    %1 = vector.multi_reduction <maximumf>, %0, %cst [2] : vector<8x16x16xf32> to vector<8x16xf32>
    %2 = vector.shape_cast %1 : vector<8x16xf32> to vector<8x16x1xf32>
    %3 = vector.broadcast %2 : vector<8x16x1xf32> to vector<8x16x16xf32>
    %4 = arith.cmpf oeq, %0, %3 : vector<8x16x16xf32>
    %5 = arith.cmpf one, %0, %0 : vector<8x16x16xf32>
    %6 = arith.ori %4, %5 : vector<8x16x16xi1>
    %7 = tpu.iota {dimensions = array<i32: 2>} : vector<8x16x16xi32>
    %c16_i32 = arith.constant 16 : i32
    %8 = vector.broadcast %c16_i32 : i32 to vector<8x16x16xi32>
    %9 = arith.select %6, %7, %8 : vector<8x16x16xi1>, vector<8x16x16xi32>
    %cst_2 = arith.constant dense<2147483647> : vector<8x16xi32>
    %10 = vector.multi_reduction <minsi>, %9, %cst_2 [2] : vector<8x16x16xi32> to vector<8x16xi32>
    %cst_3 = arith.constant dense<0xFF800000> : vector<8x16xf32>
    %11 = vector.multi_reduction <maximumf>, %0, %cst_3 [2] : vector<8x16x16xf32> to vector<8x16xf32>
    %c0_4 = arith.constant 0 : index
    %c0_5 = arith.constant 0 : index
    %12 = vector.load %arg2[%c0_4, %c0_5] : memref<8x16xf32, #tpu.memory_space<vmem>>, vector<8x16xf32>
    tpu.vector_store %arg2[%c0_4, %c0_5], %11 {strides = array<i32>} : memref<8x16xf32, #tpu.memory_space<vmem>>, vector<8x16xf32>,
    %c0_6 = arith.constant 0 : index
    %c0_7 = arith.constant 0 : index
    %13 = vector.load %arg3[%c0_6, %c0_7] : memref<8x16xi32, #tpu.memory_space<vmem>>, vector<8x16xi32>
    tpu.vector_store %arg3[%c0_6, %c0_7], %10 {strides = array<i32>} : memref<8x16xi32, #tpu.memory_space<vmem>>, vector<8x16xi32>,
    return
  }
  func.func @transform_0(%arg0: i32) -> (i32, i32, i32) {
    %c0_i32 = arith.constant 0 : i32
    %c0_i32_0 = arith.constant 0 : i32
    %c0_i32_1 = arith.constant 0 : i32
    return %arg0, %c0_i32, %c0_i32_0 : i32, i32, i32
  }
  func.func @transform_1(%arg0: i32) -> (i32, i32) {
    %c0_i32 = arith.constant 0 : i32
    %c0_i32_0 = arith.constant 0 : i32
    return %arg0, %c0_i32 : i32, i32
  }
  func.func @transform_2(%arg0: i32) -> (i32, i32) {
    %c0_i32 = arith.constant 0 : i32
    %c0_i32_0 = arith.constant 0 : i32
    return %arg0, %c0_i32 : i32, i32
  }
}

</mosaic_0001>

<bundles_post_ra>
// kernel: tpu_custom_call.1
= control target key start
LH: loop header
LB: loop body
LE: loop exit
PB: predicated region body
PF: predicated region fallthrough
CT: control target
= control target key end

     0   :  { %8 = vsyncpa [#allocation3], 0  ;;  %s1288_s0 = inlined_call_operand.hbm [shape: f32[8,16,16], index: 0, kind: input, shape index: {}]   ;;  %s1289_s1 = inlined_call_operand.hbm [shape: f32[8,16], index: 1, kind: output, shape index: {0}]   ;;  %s1290_s2 = inlined_call_operand.hbm [shape: s32[8,16], index: 2, kind: output, shape index: {1}]  }
   0x1   :  { %9 = vsyncpa [#allocation4], 0 }
   0x2   :  { %10 = vsyncpa [#allocation7], 0  ;;  %s689_s9 = smov [#allocation2]   ;;  %s617_s13 = scalar_lea.hbm %s1288_s0, 2048 }
   0x3   :  { %s16_s10 = sshll.u32 %s689_s9, 4  ;;  %p618_p0 = scmp.ne.s32.totalorder %s1288_s0, %s617_s13  ;;  %s17_s10 = int_to_ptr.vmem [resolvable:$true] %s16_s10 }
   0x4   :  { %p621_p1 = scmp.lt.u32.totalorder %s617_s13, %s1288_s0 }
   0x6   :  { %p623_p2 = pnand %p621_p1, %p618_p0 }
   0x8   :  { %626 = shalt.err (!%p623_p2)
}
   0x9   :  { %s627_s18 = scalar_lea.vmem %s17_s10, 2048  ;;  %p632_p4 = scmp.lt.s32.totalorder %s17_s10, %s17_s10 }
   0xa   :  { %p628_p3 = scmp.ne.s32.totalorder %s17_s10, %s627_s18  ;;  %p633_p5 = scmp.lt.s32.totalorder %s627_s18, %s627_s18 }
   0xc   :  { %p634_p6 = por %p633_p5, %p632_p4 }
   0xe   :  { %p635_p7 = pnand %p634_p6, %p628_p3 }
  0x10   :  { %638 = shalt.err (!%p635_p7)
}
  0x11   :  { %s690_s19 = smov 128   ;;  %s691_s20 = smov 8  }
  0x12   :  { %22 = dma.hbm_to_vmem [thread:$0]  %s1288_s0, 2048, %s17_s10, [#allocation3], %s690_s19, %s690_s19, %s691_s20  }
  0x13   :  { %683 = dma.done.wait [#allocation3], 2048  }
  0x14   :  { %684 = vsyncadd [#allocation3], 4294965248  ;;  %vm42_vm0 = vcmask 130048   ;;  %v28_v0 = vld [vmem:[#allocation2 + $0x10] sm:$0xff]  ;;  %v26_v1 = vld [vmem:[#allocation2] sm:$0xff]  ;;  %v139_v32 = vlaneseq  ;;  %s692_s0 = smov [#allocation5]  }
  0x15   :  { %v721_v2 = vld [vmem:[#allocation2 + $0x18] sm:$0xff]  ;;  %v49_v3 = vsel %vm42_vm0, %v28_v0, -inf  ;;  %v43_v4 = vsel %vm42_vm0, %v26_v1, -inf  ;;  %v725_v5 = vld [vmem:[#allocation2 + $0x8] sm:$0xff]  ;;  %v733_v9 = vld [vmem:[#allocation2 + $0x20] sm:$0xff]  ;;  %vm109_vm1 = vcmp.ne.f32.partialorder %v28_v0, %v28_v0  ;;  %vm107_vm2 = vcmp.ne.f32.partialorder %v26_v1, %v26_v1  ;;  %s589_s23 = sshll.u32 %s692_s0, 4  ;;  %s590_s23 = int_to_ptr.vmem [resolvable:$true] %s589_s23 }
  0x16   :  { %50 = vmax.xlane.f32.xlu1 %v49_v3  ;;  %44 = vmax.xlane.f32.xlu0 %v43_v4  ;;  %v52_v6 = vsel %vm42_vm0, %v721_v2, -inf  ;;  %v46_v7 = vsel %vm42_vm0, %v725_v5, -inf  ;;  %v731_v8 = vld [vmem:[#allocation2 + $0x28] sm:$0xff]  ;;  %v55_v11 = vsel %vm42_vm0, %v733_v9, -inf  ;;  %v739_v12 = vld [vmem:[#allocation2 + $0x38] sm:$0xff]  ;;  %v741_v13 = vld [vmem:[#allocation2 + $0x30] sm:$0xff]  ;;  %vm110_vm7 = vcmp.ne.f32.partialorder %v721_v2, %v721_v2  ;;  %p644_p9 = scmp.lt.s32.totalorder %s590_s23, %s590_s23 }
  0x17   :  { %v58_v10 = vsel %vm42_vm0, %v731_v8, -inf  ;;  %v64_v14 = vsel %vm42_vm0, %v739_v12, -inf  ;;  %v61_v15 = vsel %vm42_vm0, %v741_v13, -inf  ;;  %v747_v16 = vld [vmem:[#allocation2 + $0x48] sm:$0xff]  ;;  %v749_v17 = vld [vmem:[#allocation2 + $0x40] sm:$0xff]  ;;  %v755_v20 = vld [vmem:[#allocation2 + $0x58] sm:$0xff]  ;;  %vm108_vm8 = vcmp.ne.f32.partialorder %v725_v5, %v725_v5 }
  0x18   :  { %v70_v18 = vsel %vm42_vm0, %v747_v16, -inf  ;;  %v67_v19 = vsel %vm42_vm0, %v749_v17, -inf  ;;  %v757_v21 = vld [vmem:[#allocation2 + $0x50] sm:$0xff]  ;;  %v76_v22 = vsel %vm42_vm0, %v755_v20, -inf  ;;  %v763_v24 = vld [vmem:[#allocation2 + $0x68] sm:$0xff]  ;;  %v765_v25 = vld [vmem:[#allocation2 + $0x60] sm:$0xff]  ;;  %vm112_vm13 = vcmp.ne.f32.partialorder %v731_v8, %v731_v8 }
  0x19   :  { %v73_v23 = vsel %vm42_vm0, %v757_v21, -inf  ;;  %v82_v26 = vsel %vm42_vm0, %v763_v24, -inf  ;;  %v79_v27 = vsel %vm42_vm0, %v765_v25, -inf  ;;  %v771_v28 = vld [vmem:[#allocation2 + $0x78] sm:$0xff]  ;;  %v773_v29 = vld [vmem:[#allocation2 + $0x70] sm:$0xff]  ;;  %v783_v35 = vand.u32 127, %v139_v32 }
  0x1a   :  { %53 = vmax.xlane.f32.xlu1 %v52_v6  ;;  %47 = vmax.xlane.f32.xlu0 %v46_v7  ;;  %v88_v30 = vsel %vm42_vm0, %v771_v28, -inf  ;;  %v85_v31 = vsel %vm42_vm0, %v773_v29, -inf  ;;  %vm111_vm14 = vcmp.ne.f32.partialorder %v733_v9, %v733_v9  ;;  %v414_v50 = vshrl.u32 %v139_v32, 7  ;;  %s639_s24 = scalar_lea.vmem %s590_s23, 128 }
  0x1b   :  { %v417_v43 = vadd.s32 4294967288, %v783_v35  ;;  %p640_p8 = scmp.ne.s32.totalorder %s590_s23, %s639_s24  ;;  %p645_p10 = scmp.lt.s32.totalorder %s639_s24, %s639_s24 }
  0x1d   :  { %v842_v55 = vsub.s32 %v417_v43, %v414_v50  ;;  %p646_p11 = por %p645_p10, %p644_p9 }
  0x1e   :  { %59 = vmax.xlane.f32.xlu1 %v58_v10  ;;  %56 = vmax.xlane.f32.xlu0 %v55_v11 }
  0x1f   :  { %p647_p12 = pnand %p646_p11, %p640_p8 }
  0x22   :  { %65 = vmax.xlane.f32.xlu1 %v64_v14  ;;  %62 = vmax.xlane.f32.xlu0 %v61_v15 }
  0x26   :  { %71 = vmax.xlane.f32.xlu1 %v70_v18  ;;  %68 = vmax.xlane.f32.xlu0 %v67_v19 }
  0x2a   :  { %77 = vmax.xlane.f32.xlu1 %v76_v22  ;;  %74 = vmax.xlane.f32.xlu0 %v73_v23 }
  0x2e   :  { %83 = vmax.xlane.f32.xlu1 %v82_v26  ;;  %80 = vmax.xlane.f32.xlu0 %v79_v27 }
  0x32   :  { %89 = vmax.xlane.f32.xlu1 %v88_v30  ;;  %86 = vmax.xlane.f32.xlu0 %v85_v31 }
  0xa3   :  { %v779_v33 = vpop.xlane.xlu1 %50  ;;  %v781_v34 = vpop.xlane.xlu0 %44 }
  0xa4   :  { %vm93_vm3 = vcmp.eq.f32.partialorder %v28_v0, %v779_v33  ;;  %vm91_vm4 = vcmp.eq.f32.partialorder %v26_v1, %v781_v34  ;;  %v868_v0 = vsub.s32 %v783_v35, %v414_v50 }
  0xa5   :  { %vm125_vm5 = vmor %vm93_vm3, %vm109_vm1 }
  0xa6   :  { %v143_v36 = vsel %vm125_vm5, %v783_v35, 16  ;;  %vm123_vm6 = vmor %vm91_vm4, %vm107_vm2  ;;  %vm114_vm4 = vcmp.ne.f32.partialorder %v739_v12, %v739_v12  ;;  %vm113_vm5 = vcmp.ne.f32.partialorder %v741_v13, %v741_v13  ;;  %v416_v26 = vrot.slane %v781_v34, %v868_v0 }
  0xa7   :  { %v141_v37 = vsel %vm123_vm6, %v783_v35, 16  ;;  %v791_v38 = vpop.xlane.xlu1 %53  ;;  %v795_v39 = vpop.xlane.xlu0 %47  ;;  %v802_v40 = vsel %vm42_vm0, %v143_v36, 2147483647 }
  0xa8   :  { %vm94_vm9 = vcmp.eq.f32.partialorder %v721_v2, %v791_v38  ;;  %vm92_vm10 = vcmp.eq.f32.partialorder %v725_v5, %v795_v39  ;;  %v809_v42 = vsel %vm42_vm0, %v141_v37, 2147483647  ;;  %v189_v49 = vshra.s32 %v802_v40, 16 }
  0xa9   :  { %vm804_vm11 = vmor %vm94_vm9, %vm110_vm7  ;;  %v159_v45 = vshra.s32 %v809_v42, 16  ;;  %v427_v5 = vrot.slane %v779_v33, %v868_v0  ;;  %v421_v15 = vrot.slane %v795_v39, %v842_v55 }
  0xaa   :  { %v144_v44 = vsel %vm804_vm11, %v783_v35, 16  ;;  %vm124_vm12 = vmor %vm92_vm10, %vm108_vm8  ;;  %v864_v62 = vcvt.s32.f32 %v189_v49  ;;  %vm422_vm8 = vcmask 130112   ;;  %vm116_vm10 = vcmp.ne.f32.partialorder %v747_v16, %v747_v16 }
  0xab   :  { %v142_v46 = vsel %vm124_vm12, %v783_v35, 16  ;;  %v819_v47 = vpop.xlane.xlu1 %59  ;;  %v823_v48 = vpop.xlane.xlu0 %56  ;;  %v831_v51 = vsel %vm42_vm0, %v144_v44, 2147483647  ;;  %v837_v53 = vcvt.s32.f32 %v159_v45  ;;  %vm487_vm11 = vcmask 1041409  }
  0xac   :  { %vm96_vm15 = vcmp.eq.f32.partialorder %v731_v8, %v819_v47  ;;  %vm95_vm1 = vcmp.eq.f32.partialorder %v733_v9, %v823_v48  ;;  %v840_v54 = vsel %vm42_vm0, %v142_v46, 2147483647  ;;  %v204_v63 = vshra.s32 %v831_v51, 16 }
  0xad   :  { %vm833_vm2 = vmor %vm96_vm15, %vm112_vm13  ;;  %v174_v58 = vshra.s32 %v840_v54, 16  ;;  %162 = vmin.xlane.f32.xlu0 %v837_v53  ;;  %vm115_vm13 = vcmp.ne.f32.partialorder %v749_v17, %v749_v17  ;;  %v431_v9 = vrot.slane %v791_v38, %v842_v55  ;;  %v423_v37 = vsel %vm422_vm8, %v421_v15, %v416_v26 }
  0xae   :  { %v146_v56 = vsel %vm833_vm2, %v783_v35, 16  ;;  %vm847_vm3 = vmor %vm95_vm1, %vm111_vm14  ;;  %vm118_vm2 = vcmp.ne.f32.partialorder %v755_v20, %v755_v20  ;;  %v440_v39 = vrot.slane %v819_v47, %v842_v55  ;;  %v436_v41 = vrot.slane %v823_v48, %v868_v0 }
  0xaf   :  { %v145_v59 = vsel %vm847_vm3, %v783_v35, 16  ;;  %v858_v60 = vpop.xlane.xlu1 %65  ;;  %v862_v61 = vpop.xlane.xlu0 %62  ;;  %v875_v1 = vsel %vm42_vm0, %v146_v56, 2147483647  ;;  %v881_v3 = vcvt.s32.f32 %v174_v58  ;;  %vm117_vm3 = vcmp.ne.f32.partialorder %v757_v21, %v757_v21 }
  0xb0   :  { %vm98_vm6 = vcmp.eq.f32.partialorder %v739_v12, %v858_v60  ;;  %vm97_vm7 = vcmp.eq.f32.partialorder %v741_v13, %v862_v61  ;;  %v886_v4 = vsel %vm42_vm0, %v145_v59, 2147483647  ;;  %v914_v13 = vcvt.s32.f32 %v204_v63 }
  0xb1   :  { %vm877_vm9 = vmor %vm98_vm6, %vm114_vm4  ;;  %v219_v8 = vshra.s32 %v886_v4, 16  ;;  %192 = vmin.xlane.f32.xlu0 %v864_v62  ;;  %177 = vmin.xlane.f32.xlu1 %v881_v3  ;;  %v234_v14 = vshra.s32 %v875_v1, 16  ;;  %v432_v31 = vsel %vm422_vm8, %v431_v9, %v427_v5  ;;  %v449_v46 = vrot.slane %v858_v60, %v842_v55 }
  0xb2   :  { %v148_v6 = vsel %vm877_vm9, %v783_v35, 16  ;;  %vm896_vm12 = vmor %vm97_vm7, %vm113_vm5  ;;  %vm120_vm5 = vcmp.ne.f32.partialorder %v763_v24, %v763_v24  ;;  %v445_v47 = vrot.slane %v862_v61, %v868_v0  ;;  %v488_v59 = vsel %vm487_vm11, %v432_v31, %v423_v37 }
  0xb3   :  { %v147_v10 = vsel %vm896_vm12, %v783_v35, 16  ;;  %v910_v11 = vpop.xlane.xlu1 %71  ;;  %v912_v12 = vpop.xlane.xlu0 %68  ;;  %v924_v18 = vsel %vm42_vm0, %v148_v6, 2147483647  ;;  %v933_v22 = vcvt.s32.f32 %v219_v8  ;;  %v967_v34 = vcvt.s32.f32 %v234_v14 }
  0xb4   :  { %vm100_vm14 = vcmp.eq.f32.partialorder %v747_v16, %v910_v11  ;;  %vm99_vm15 = vcmp.eq.f32.partialorder %v749_v17, %v912_v12  ;;  %v940_v23 = vsel %vm42_vm0, %v147_v10, 2147483647  ;;  %v264_v36 = vshra.s32 %v924_v18, 16 }
  0xb5   :  { %vm929_vm1 = vmor %vm100_vm14, %vm116_vm10  ;;  %v249_v30 = vshra.s32 %v940_v23, 16  ;;  %207 = vmin.xlane.f32.xlu1 %v914_v13  ;;  %222 = vmin.xlane.f32.xlu0 %v933_v22  ;;  %vm489_vm10 = vcmask 1042434   ;;  %vm119_vm14 = vcmp.ne.f32.partialorder %v765_v25, %v765_v25  ;;  %v441_v2 = vsel %vm422_vm8, %v440_v39, %v436_v41 }
  0xb6   :  { %v150_v16 = vsel %vm929_vm1, %v783_v35, 16  ;;  %vm950_vm4 = vmor %vm99_vm15, %vm115_vm13  ;;  %vm491_vm13 = vcmask 1043459   ;;  %v1016_v56 = vcvt.s32.f32 %v264_v36  ;;  %v450_v5 = vsel %vm422_vm8, %v449_v46, %v445_v47 }
  0xb7   :  { %v149_v32 = vsel %vm950_vm4, %v783_v35, 16  ;;  %v963_v17 = vpop.xlane.xlu1 %77  ;;  %v965_v33 = vpop.xlane.xlu0 %74  ;;  %v976_v38 = vsel %vm42_vm0, %v150_v16, 2147483647  ;;  %v989_v44 = vcvt.s32.f32 %v249_v30  ;;  %vm121_vm4 = vcmp.ne.f32.partialorder %v773_v29, %v773_v29 }
  0xb8   :  { %vm102_vm6 = vcmp.eq.f32.partialorder %v755_v20, %v963_v17  ;;  %vm101_vm7 = vcmp.eq.f32.partialorder %v757_v21, %v965_v33  ;;  %v992_v45 = vsel %vm42_vm0, %v149_v32, 2147483647  ;;  %v294_v57 = vshra.s32 %v976_v38, 16 }
  0xb9   :  { %vm985_vm9 = vmor %vm102_vm6, %vm118_vm2  ;;  %v279_v49 = vshra.s32 %v992_v45, 16  ;;  %237 = vmin.xlane.f32.xlu1 %v967_v34  ;;  %252 = vmin.xlane.f32.xlu0 %v989_v44  ;;  %vm122_vm2 = vcmp.ne.f32.partialorder %v771_v28, %v771_v28  ;;  %v458_v8 = vrot.slane %v910_v11, %v842_v55  ;;  %v454_v19 = vrot.slane %v912_v12, %v868_v0 }
  0xba   :  { %v152_v20 = vsel %vm985_vm9, %v783_v35, 16  ;;  %vm1004_vm12 = vmor %vm101_vm7, %vm117_vm3  ;;  %v467_v26 = vrot.slane %v963_v17, %v842_v55  ;;  %v463_v16 = vrot.slane %v965_v33, %v868_v0 }
  0xbb   :  { %v151_v50 = vsel %vm1004_vm12, %v783_v35, 16  ;;  %v84_v52 = vpop.xlane.xlu1 %83  ;;  %v81_v21 = vpop.xlane.xlu0 %80  ;;  %v1024_v58 = vsel %vm42_vm0, %v152_v20, 2147483647  ;;  %v1034_v61 = vcvt.s32.f32 %v279_v49  ;;  %v459_v47 = vsel %vm422_vm8, %v458_v8, %v454_v19 }
  0xbc   :  { %vm104_vm15 = vcmp.eq.f32.partialorder %v763_v24, %v84_v52  ;;  %vm103_vm1 = vcmp.eq.f32.partialorder %v765_v25, %v81_v21  ;;  %v1039_v63 = vsel %vm42_vm0, %v151_v50, 2147483647  ;;  %v1061_v25 = vcvt.s32.f32 %v294_v57 }
  0xbd   :  { %vm1030_vm3 = vmor %vm104_vm15, %vm120_vm5  ;;  %v309_v7 = vshra.s32 %v1039_v63, 16  ;;  %267 = vmin.xlane.f32.xlu1 %v1016_v56  ;;  %282 = vmin.xlane.f32.xlu0 %v1034_v61  ;;  %v324_v15 = vshra.s32 %v1024_v58, 16  ;;  %v476_v31 = vrot.slane %v84_v52, %v842_v55  ;;  %v472_v32 = vrot.slane %v81_v21, %v868_v0 }
  0xbe   :  { %v154_v24 = vsel %vm1030_vm3, %v783_v35, 16  ;;  %vm1049_vm5 = vmor %vm103_vm1, %vm119_vm14  ;;  %vm493_vm14 = vcmask 1044484   ;;  %v468_v49 = vsel %vm422_vm8, %v467_v26, %v463_v16  ;;  %vm495_vm15 = vcmask 1045509  }
  0xbf   :  { %v153_v9 = vsel %vm1049_vm5, %v783_v35, 16  ;;  %v90_v10 = vpop.xlane.xlu1 %89  ;;  %v87_v14 = vpop.xlane.xlu0 %86  ;;  %v1069_v11 = vsel %vm42_vm0, %v154_v24, 2147483647  ;;  %v1082_v12 = vcvt.s32.f32 %v309_v7  ;;  %v1100_v37 = vcvt.s32.f32 %v324_v15 }
  0xc0   :  { %vm106_vm6 = vcmp.eq.f32.partialorder %v771_v28, %v90_v10  ;;  %vm105_vm7 = vcmp.eq.f32.partialorder %v773_v29, %v87_v14  ;;  %v1085_v30 = vsel %vm42_vm0, %v153_v9, 2147483647  ;;  %v485_v33 = vrot.slane %v90_v10, %v842_v55 }
  0xc1   :  { %vm1078_vm9 = vmor %vm106_vm6, %vm122_vm2  ;;  %v339_v28 = vshra.s32 %v1085_v30, 16  ;;  %297 = vmin.xlane.f32.xlu1 %v1061_v25  ;;  %312 = vmin.xlane.f32.xlu0 %v1082_v12  ;;  %v354_v39 = vshra.s32 %v1069_v11, 16  ;;  %v481_v41 = vrot.slane %v87_v14, %v868_v0  ;;  %vm497_vm1 = vcmask 1046534  }
  0xc2   :  { %v156_v17 = vsel %vm1078_vm9, %v783_v35, 16  ;;  %vm137_vm12 = vmor %vm105_vm7, %vm121_vm4  ;;  %v477_v50 = vsel %vm422_vm8, %v476_v31, %v472_v32  ;;  %vm499_vm2 = vcmask 1047559   ;;  %v158_v7 = vand.u32 65535, %v809_v42 }
  0xc3   :  { %v155_v36 = vsel %vm137_vm12, %v783_v35, 16  ;;  %v1104_v43 = vcvt.s32.f32 %v339_v28  ;;  %v1110_v46 = vsel %vm42_vm0, %v156_v17, 2147483647  ;;  %v490_v35 = vsel %vm489_vm10, %v441_v2, %v488_v59 }
  0xc4   :  { %v1107_v29 = vsel %vm42_vm0, %v155_v36, 2147483647  ;;  %v492_v48 = vsel %vm491_vm13, %v450_v5, %v490_v35  ;;  %v1120_v52 = vcvt.s32.f32 %v354_v39  ;;  %v384_v57 = vshra.s32 %v1110_v46, 16 }
  0xc5   :  { %v369_v20 = vshra.s32 %v1107_v29, 16  ;;  %327 = vmin.xlane.f32.xlu1 %v1100_v37  ;;  %342 = vmin.xlane.f32.xlu0 %v1104_v43  ;;  %v494_v59 = vsel %vm493_vm14, %v459_v47, %v492_v48  ;;  %v486_v60 = vsel %vm422_vm8, %v485_v33, %v481_v41  ;;  %v160_v9 = vcvt.s32.f32 %v158_v7 }
  0xc6   :  { %v496_v2 = vsel %vm495_vm15, %v468_v49, %v494_v59  ;;  %v1131_v24 = vcvt.s32.f32 %v384_v57  ;;  %v173_v10 = vand.u32 65535, %v840_v54  ;;  %v188_v14 = vand.u32 65535, %v802_v40 }
  0xc7   :  { %v1122_v21 = vcvt.s32.f32 %v369_v20  ;;  %v498_v5 = vsel %vm497_vm1, %v477_v50, %v496_v2  ;;  %v203_v42 = vand.u32 65535, %v831_v51  ;;  %v218_v31 = vand.u32 65535, %v886_v4 }
  0xc8   :  { %v500_v6 = vsel %vm499_vm2, %v486_v60, %v498_v5  ;;  %v175_v16 = vcvt.s32.f32 %v173_v10  ;;  %v190_v27 = vcvt.s32.f32 %v188_v14  ;;  %v233_v51 = vand.u32 65535, %v875_v1 }
  0xc9   :  { %357 = vmin.xlane.f32.xlu1 %v1120_v52  ;;  %372 = vmin.xlane.f32.xlu0 %v1122_v21  ;;  %502 = vst.msk [vmem:[#allocation5] sm:$0xff] %vm42_vm0, %v500_v6  ;;  %v205_v17 = vcvt.s32.f32 %v203_v42  ;;  %v220_v28 = vcvt.s32.f32 %v218_v31  ;;  %v248_v4 = vand.u32 65535, %v940_v23  ;;  %v263_v1 = vand.u32 65535, %v924_v18 }
  0xca   :  { %v235_v39 = vcvt.s32.f32 %v233_v51  ;;  %v278_v23 = vand.u32 65535, %v992_v45  ;;  %v293_v18 = vand.u32 65535, %v976_v38  ;;  %v308_v45 = vand.u32 65535, %v1039_v63 }
  0xcb   :  { %v250_v41 = vcvt.s32.f32 %v248_v4  ;;  %v265_v20 = vcvt.s32.f32 %v263_v1  ;;  %v323_v38 = vand.u32 65535, %v1024_v58  ;;  %v338_v63 = vand.u32 65535, %v1085_v30 }
  0xcc   :  { %v280_v48 = vcvt.s32.f32 %v278_v23  ;;  %v295_v57 = vcvt.s32.f32 %v293_v18  ;;  %v310_v59 = vcvt.s32.f32 %v308_v45  ;;  %v353_v58 = vand.u32 65535, %v1069_v11 }
  0xcd   :  { %387 = vmin.xlane.f32.xlu1 %v1131_v24  ;;  %v325_v5 = vcvt.s32.f32 %v323_v38  ;;  %v340_v6 = vcvt.s32.f32 %v338_v63  ;;  %v368_v30 = vand.u32 65535, %v1107_v29  ;;  %v383_v11 = vand.u32 65535, %v1110_v46 }
  0xce   :  { %v355_v10 = vcvt.s32.f32 %v353_v58 }
  0xcf   :  { %v370_v14 = vcvt.s32.f32 %v368_v30 }
 0x13a   :  { %v1137_v8 = vpop.xlane.xlu0 %162 }
 0x13b   :  { %vm164_vm3 = vcmp.eq.f32.partialorder %v837_v53, %v1137_v8 }
 0x13c   :  { %v165_v15 = vsel %vm164_vm3, %v160_v9, inf }
 0x13d   :  { %166 = vmin.xlane.f32.xlu0 %v165_v15  ;;  %v385_v15 = vcvt.s32.f32 %v383_v11 }
 0x13e   :  { %v1143_v19 = vpop.xlane.xlu1 %177  ;;  %v1145_v26 = vpop.xlane.xlu0 %192 }
 0x13f   :  { %vm179_vm4 = vcmp.eq.f32.partialorder %v881_v3, %v1143_v19  ;;  %vm194_vm5 = vcmp.eq.f32.partialorder %v864_v62, %v1145_v26 }
 0x140   :  { %v180_v40 = vsel %vm179_vm4, %v175_v16, inf  ;;  %v195_v53 = vsel %vm194_vm5, %v190_v27, inf }
 0x141   :  { %181 = vmin.xlane.f32.xlu1 %v180_v40  ;;  %196 = vmin.xlane.f32.xlu0 %v195_v53 }
 0x142   :  { %v1153_v54 = vpop.xlane.xlu1 %207  ;;  %v1155_v32 = vpop.xlane.xlu0 %222 }
 0x143   :  { %vm209_vm6 = vcmp.eq.f32.partialorder %v914_v13, %v1153_v54  ;;  %vm224_vm7 = vcmp.eq.f32.partialorder %v933_v22, %v1155_v32 }
 0x144   :  { %v210_v62 = vsel %vm209_vm6, %v205_v17, inf  ;;  %v225_v3 = vsel %vm224_vm7, %v220_v28, inf }
 0x145   :  { %211 = vmin.xlane.f32.xlu1 %v210_v62  ;;  %226 = vmin.xlane.f32.xlu0 %v225_v3 }
 0x146   :  { %v1163_v33 = vpop.xlane.xlu1 %237  ;;  %v1165_v36 = vpop.xlane.xlu0 %252 }
 0x147   :  { %vm239_vm9 = vcmp.eq.f32.partialorder %v967_v34, %v1163_v33  ;;  %vm254_vm12 = vcmp.eq.f32.partialorder %v989_v44, %v1165_v36 }
 0x148   :  { %v240_v13 = vsel %vm239_vm9, %v235_v39, inf  ;;  %v255_v22 = vsel %vm254_vm12, %v250_v41, inf }
 0x149   :  { %241 = vmin.xlane.f32.xlu1 %v240_v13  ;;  %256 = vmin.xlane.f32.xlu0 %v255_v22 }
 0x14a   :  { %v1173_v35 = vpop.xlane.xlu1 %267  ;;  %v1175_v47 = vpop.xlane.xlu0 %282 }
 0x14b   :  { %vm269_vm3 = vcmp.eq.f32.partialorder %v1016_v56, %v1173_v35  ;;  %vm284_vm4 = vcmp.eq.f32.partialorder %v1034_v61, %v1175_v47 }
 0x14c   :  { %v270_v34 = vsel %vm269_vm3, %v265_v20, inf  ;;  %v285_v44 = vsel %vm284_vm4, %v280_v48, inf }
 0x14d   :  { %271 = vmin.xlane.f32.xlu1 %v270_v34  ;;  %286 = vmin.xlane.f32.xlu0 %v285_v44 }
 0x14e   :  { %v1183_v49 = vpop.xlane.xlu1 %297  ;;  %v1185_v50 = vpop.xlane.xlu0 %312 }
 0x14f   :  { %vm299_vm5 = vcmp.eq.f32.partialorder %v1061_v25, %v1183_v49  ;;  %vm314_vm6 = vcmp.eq.f32.partialorder %v1082_v12, %v1185_v50 }
 0x150   :  { %v300_v56 = vsel %vm299_vm5, %v295_v57, inf  ;;  %v315_v61 = vsel %vm314_vm6, %v310_v59, inf }
 0x151   :  { %301 = vmin.xlane.f32.xlu1 %v300_v56  ;;  %316 = vmin.xlane.f32.xlu0 %v315_v61 }
 0x152   :  { %v1193_v60 = vpop.xlane.xlu1 %327  ;;  %v1195_v2 = vpop.xlane.xlu0 %342 }
 0x153   :  { %vm329_vm7 = vcmp.eq.f32.partialorder %v1100_v37, %v1193_v60  ;;  %vm344_vm9 = vcmp.eq.f32.partialorder %v1104_v43, %v1195_v2 }
 0x154   :  { %v330_v25 = vsel %vm329_vm7, %v325_v5, inf  ;;  %v345_v12 = vsel %vm344_vm9, %v340_v6, inf }
 0x155   :  { %331 = vmin.xlane.f32.xlu1 %v330_v25  ;;  %346 = vmin.xlane.f32.xlu0 %v345_v12 }
 0x156   :  { %v1203_v7 = vpop.xlane.xlu1 %357  ;;  %v1205_v9 = vpop.xlane.xlu0 %372 }
 0x157   :  { %vm359_vm12 = vcmp.eq.f32.partialorder %v1120_v52, %v1203_v7  ;;  %vm374_vm3 = vcmp.eq.f32.partialorder %v1122_v21, %v1205_v9 }
 0x158   :  { %v360_v37 = vsel %vm359_vm12, %v355_v10, inf  ;;  %v375_v43 = vsel %vm374_vm3, %v370_v14, inf }
 0x159   :  { %361 = vmin.xlane.f32.xlu1 %v360_v37  ;;  %376 = vmin.xlane.f32.xlu0 %v375_v43 }
 0x15a   :  { %v1212_v29 = vpop.xlane.xlu1 %387 }
 0x15b   :  { %vm389_vm4 = vcmp.eq.f32.partialorder %v1131_v24, %v1212_v29 }
 0x15c   :  { %v390_v16 = vsel %vm389_vm4, %v385_v15, inf }
 0x15d   :  { %391 = vmin.xlane.f32.xlu1 %v390_v16 }
 0x15e   :  { %650 = shalt.err (!%p647_p12)
}
 0x15f   :  { %s651_s27 = scalar_lea.hbm %s1289_s1, 128 }
 0x160   :  { %p652_p13 = scmp.ne.s32.totalorder %s1289_s1, %s651_s27  ;;  %p655_p0 = scmp.lt.u32.totalorder %s651_s27, %s1289_s1 }
 0x162   :  { %p657_p1 = pnand %p655_p0, %p652_p13 }
 0x164   :  { %660 = shalt.err (!%p657_p1)
}
 0x165   :  { %592 = dma.vmem_to_hbm [thread:$0]  %s590_s23, 128, %s1289_s1, [#allocation4]   ;;  %v169_v46 = vcvt.f32.s32 %v1137_v8  ;;  %v184_v21 = vcvt.f32.s32 %v1143_v19  ;;  %v199_v27 = vcvt.f32.s32 %v1145_v26  ;;  %v214_v31 = vcvt.f32.s32 %v1153_v54 }
 0x166   :  { %v229_v3 = vcvt.f32.s32 %v1155_v32  ;;  %v244_v41 = vcvt.f32.s32 %v1163_v33  ;;  %v259_v20 = vcvt.f32.s32 %v1165_v36  ;;  %v274_v34 = vcvt.f32.s32 %v1173_v35  ;;  %s693_s1 = smov [#allocation6]  }
 0x167   :  { %v170_v42 = vshll.u32 %v169_v46, 16  ;;  %v185_v17 = vshll.u32 %v184_v21, 16  ;;  %v200_v62 = vshll.u32 %v199_v27, 16  ;;  %v215_v8 = vshll.u32 %v214_v31, 16  ;;  %s599_s6 = sshll.u32 %s693_s1, 4  ;;  %s600_s6 = int_to_ptr.vmem [resolvable:$true] %s599_s6 }
 0x168   :  { %v230_v48 = vshll.u32 %v229_v3, 16  ;;  %v245_v32 = vshll.u32 %v244_v41, 16  ;;  %v260_v61 = vshll.u32 %v259_v20, 16  ;;  %v289_v5 = vcvt.f32.s32 %v1175_v47  ;;  %s661_s7 = scalar_lea.vmem %s600_s6, 128  ;;  %p666_p3 = scmp.lt.s32.totalorder %s600_s6, %s600_s6 }
 0x169   :  { %v275_v58 = vshll.u32 %v274_v34, 16  ;;  %v304_v30 = vcvt.f32.s32 %v1183_v49  ;;  %v319_v15 = vcvt.f32.s32 %v1185_v50  ;;  %v334_v49 = vcvt.f32.s32 %v1193_v60  ;;  %p662_p2 = scmp.ne.s32.totalorder %s600_s6, %s661_s7  ;;  %p667_p4 = scmp.lt.s32.totalorder %s661_s7, %s661_s7 }
 0x16a   :  { %v290_v47 = vshll.u32 %v289_v5, 16  ;;  %v349_v50 = vcvt.f32.s32 %v1195_v2  ;;  %v364_v60 = vcvt.f32.s32 %v1203_v7  ;;  %v379_v2 = vcvt.f32.s32 %v1205_v9 }
 0x16b   :  { %v394_v7 = vcvt.f32.s32 %v1212_v29  ;;  %p668_p5 = por %p667_p4, %p666_p3 }
 0x16c   :  { %v365_v20 = vshll.u32 %v364_v60, 16 }
 0x16d   :  { %p669_p6 = pnand %p668_p5, %p662_p2 }
 0x1ca   :  { %v167_v52 = vpop.xlane.xlu0 %166 }
 0x1cb   :  { %v168_v24 = vcvt.f32.s32 %v167_v52  ;;  %v305_v52 = vshll.u32 %v304_v30, 16 }
 0x1cd   :  { %v171_v28 = vadd.s32 %v170_v42, %v168_v24 }
 0x1ce   :  { %v182_v40 = vpop.xlane.xlu1 %181  ;;  %v197_v53 = vpop.xlane.xlu0 %196 }
 0x1cf   :  { %v183_v51 = vcvt.f32.s32 %v182_v40  ;;  %v198_v4 = vcvt.f32.s32 %v197_v53  ;;  %v506_v26 = vrot.slane %v171_v28, %v868_v0  ;;  %v320_v28 = vshll.u32 %v319_v15, 16 }
 0x1d1   :  { %v186_v39 = vadd.s32 %v185_v17, %v183_v51  ;;  %v201_v19 = vadd.s32 %v200_v62, %v198_v4  ;;  %v335_v62 = vshll.u32 %v334_v49, 16 }
 0x1d2   :  { %v212_v1 = vpop.xlane.xlu1 %211  ;;  %v227_v23 = vpop.xlane.xlu0 %226 }
 0x1d3   :  { %v510_v54 = vrot.slane %v186_v39, %v842_v55  ;;  %v213_v13 = vcvt.f32.s32 %v212_v1  ;;  %v228_v22 = vcvt.f32.s32 %v227_v23  ;;  %v515_v33 = vrot.slane %v201_v19, %v868_v0 }
 0x1d5   :  { %v511_v18 = vsel %vm422_vm8, %v510_v54, %v506_v26  ;;  %v216_v45 = vadd.s32 %v215_v8, %v213_v13  ;;  %v231_v38 = vadd.s32 %v230_v48, %v228_v22  ;;  %v350_v54 = vshll.u32 %v349_v50, 16 }
 0x1d6   :  { %v242_v44 = vpop.xlane.xlu1 %241  ;;  %v257_v57 = vpop.xlane.xlu0 %256 }
 0x1d7   :  { %v519_v59 = vrot.slane %v216_v45, %v842_v55  ;;  %v243_v63 = vcvt.f32.s32 %v242_v44  ;;  %v258_v56 = vcvt.f32.s32 %v257_v57  ;;  %v524_v14 = vrot.slane %v231_v38, %v868_v0 }
 0x1d9   :  { %v520_v36 = vsel %vm422_vm8, %v519_v59, %v515_v33  ;;  %v246_v6 = vadd.s32 %v245_v32, %v243_v63  ;;  %v261_v25 = vadd.s32 %v260_v61, %v258_v56  ;;  %v380_v59 = vshll.u32 %v379_v2, 16 }
 0x1da   :  { %v575_v35 = vsel %vm487_vm11, %v520_v36, %v511_v18  ;;  %v272_v12 = vpop.xlane.xlu1 %271  ;;  %v287_v10 = vpop.xlane.xlu0 %286  ;;  %v395_v63 = vshll.u32 %v394_v7, 16 }
 0x1db   :  { %v528_v11 = vrot.slane %v246_v6, %v842_v55  ;;  %v273_v37 = vcvt.f32.s32 %v272_v12  ;;  %v288_v43 = vcvt.f32.s32 %v287_v10  ;;  %v533_v24 = vrot.slane %v261_v25, %v868_v0 }
 0x1dd   :  { %v529_v16 = vsel %vm422_vm8, %v528_v11, %v524_v14  ;;  %v276_v46 = vadd.s32 %v275_v58, %v273_v37  ;;  %v291_v40 = vadd.s32 %v290_v47, %v288_v43 }
 0x1de   :  { %v576_v21 = vsel %vm489_vm10, %v529_v16, %v575_v35  ;;  %v302_v27 = vpop.xlane.xlu1 %301  ;;  %v317_v42 = vpop.xlane.xlu0 %316 }
 0x1df   :  { %v537_v31 = vrot.slane %v276_v46, %v842_v55  ;;  %v303_v53 = vcvt.f32.s32 %v302_v27  ;;  %v318_v17 = vcvt.f32.s32 %v317_v42  ;;  %v542_v19 = vrot.slane %v291_v40, %v868_v0 }
 0x1e1   :  { %v538_v51 = vsel %vm422_vm8, %v537_v31, %v533_v24  ;;  %v306_v4 = vadd.s32 %v305_v52, %v303_v53  ;;  %v321_v39 = vadd.s32 %v320_v28, %v318_v17 }
 0x1e2   :  { %v577_v3 = vsel %vm491_vm13, %v538_v51, %v576_v21  ;;  %v332_v8 = vpop.xlane.xlu1 %331  ;;  %v347_v41 = vpop.xlane.xlu0 %346 }
 0x1e3   :  { %v546_v1 = vrot.slane %v306_v4, %v842_v55  ;;  %v333_v23 = vcvt.f32.s32 %v332_v8  ;;  %v348_v26 = vcvt.f32.s32 %v347_v41  ;;  %v551_v48 = vrot.slane %v321_v39, %v868_v0 }
 0x1e5   :  { %v547_v13 = vsel %vm422_vm8, %v546_v1, %v542_v19  ;;  %v336_v22 = vadd.s32 %v335_v62, %v333_v23  ;;  %v351_v33 = vadd.s32 %v350_v54, %v348_v26 }
 0x1e6   :  { %v362_v18 = vpop.xlane.xlu1 %361  ;;  %v377_v45 = vpop.xlane.xlu0 %376  ;;  %v578_v32 = vsel %vm493_vm14, %v547_v13, %v577_v3 }
 0x1e7   :  { %v555_v34 = vrot.slane %v336_v22, %v842_v55  ;;  %v363_v44 = vcvt.f32.s32 %v362_v18  ;;  %v378_v57 = vcvt.f32.s32 %v377_v45  ;;  %v560_v29 = vrot.slane %v351_v33, %v868_v0 }
 0x1e9   :  { %v556_v9 = vsel %vm422_vm8, %v555_v34, %v551_v48  ;;  %v366_v38 = vadd.s32 %v365_v20, %v363_v44  ;;  %v381_v36 = vadd.s32 %v380_v59, %v378_v57 }
 0x1ea   :  { %v392_v56 = vpop.xlane.xlu1 %391  ;;  %v579_v61 = vsel %vm495_vm15, %v556_v9, %v578_v32 }
 0x1eb   :  { %v564_v5 = vrot.slane %v366_v38, %v842_v55  ;;  %v393_v6 = vcvt.f32.s32 %v392_v56  ;;  %v569_v25 = vrot.slane %v381_v36, %v868_v0 }
 0x1ed   :  { %v396_v58 = vadd.s32 %v395_v63, %v393_v6  ;;  %v565_v30 = vsel %vm422_vm8, %v564_v5, %v560_v29 }
 0x1ee   :  { %v580_v35 = vsel %vm497_vm1, %v565_v30, %v579_v61 }
 0x1ef   :  { %v573_v12 = vrot.slane %v396_v58, %v842_v55 }
 0x1f1   :  { %v574_v10 = vsel %vm422_vm8, %v573_v12, %v569_v25 }
 0x1f2   :  { %v581_v14 = vsel %vm499_vm2, %v574_v10, %v580_v35 }
 0x1f3   :  { %582 = vst.msk [vmem:[#allocation6] sm:$0xff] %vm42_vm0, %v581_v14 }
 0x1f4   :  { %672 = shalt.err (!%p669_p6)
}
 0x1f5   :  { %s673_s10 = scalar_lea.hbm %s1290_s2, 128 }
 0x1f6   :  { %p674_p7 = scmp.ne.s32.totalorder %s1290_s2, %s673_s10  ;;  %p677_p8 = scmp.lt.u32.totalorder %s673_s10, %s1290_s2 }
 0x1f8   :  { %p679_p9 = pnand %p677_p8, %p674_p7 }
 0x1fa   :  { %682 = shalt.err (!%p679_p9)
}
 0x1fb   :  { %602 = dma.vmem_to_hbm [thread:$0]  %s600_s6, 128, %s1290_s2, [#allocation7]  }
 0x1fc   :  { %685 = dma.done.wait [#allocation4], 128  }
 0x1fd   :  { %686 = vsyncadd [#allocation4], 4294967168 }
 0x1fe   :  { %687 = dma.done.wait [#allocation7], 128  }
 0x1ff   :  { %688 = vsyncadd [#allocation7], 4294967168 }
 0x200   :  { %609 = vsyncpa [#allocation3], 1 }
 0x201   :  { %610 = vsyncpa [#allocation4], 1 }
 0x202   :  { %611 = vsyncpa [#allocation7], 1 }

</bundles_post_ra>
